<compile_context>
chip_gen: v5e
topology: v5e:2x2
jax: 0.10.0
libtpu: 0.0.40
codegen_flags: <defaults>
</compile_context>

<pallas_src>
import functools

import jax
import jax.numpy as jnp
from jax.experimental import pallas as pl
from jax.experimental.pallas import tpu as pltpu

GAMMA = 2.0
_OUT_BLOCK = (8, 128)   # one aligned (sublane, lane) output tile per grid step


def _focal_loss_tile_kernel(x_ref, t_ref, out_ref, *, gamma, num_tiles,
                            valid_last_rows, binary_targets):
    x = x_ref[...].astype(jnp.float32)
    t = t_ref[...].astype(jnp.float32)

    # Stable BCE-with-logits, identical to
    #   x - x*t + max(-x,0) + log(exp(-max(-x,0)) + exp(-x - max(-x,0)))
    e = jnp.exp(-jnp.abs(x))
    bce = jnp.maximum(x, 0.0) - x * t + jnp.log1p(e)

    # Focal modulation: exp(gamma * logsigmoid(z)) == sigmoid(z)**gamma,
    # with z = -x*(2t-1) = x*(1-2t).
    z = x * (1.0 - 2.0 * t)
    if binary_targets:
        # For t in {0,1}: |z| == |x|, so reuse exp(-|x|) (saves one EUP exp).
        ez = e
    else:
        ez = jnp.exp(-jnp.abs(z))

    if gamma == 2.0:
        # sigmoid(z) computed stably, then squared: no extra exp/log needed.
        s = jnp.where(z >= 0.0, 1.0, ez) / (1.0 + ez)
        w = s * s
    else:
        # Generic gamma: stable logsigmoid, then one exp.
        w = jnp.exp(gamma * (jnp.minimum(z, 0.0) - jnp.log1p(ez)))

    loss = w * bce

    def write(partial):
        # Splat the per-tile partial sum over this tile's aligned (8,128)
        # output block; the wrapper reads one slot per tile.  No carried
        # accumulator -> grid axis stays fully parallel (megacore-friendly).
        out_ref[...] = jnp.zeros(_OUT_BLOCK, jnp.float32) + partial

    if valid_last_rows is None:
        write(jnp.sum(loss))
    else:
        is_last = pl.program_id(0) == num_tiles - 1

        @pl.when(pl.program_id(0) != num_tiles - 1)
        def _():
            write(jnp.sum(loss))

        @pl.when(is_last)
        def _():
            # Zero rows of the partial edge tile that lie past the real data.
            # jnp.where is a select: garbage (possibly NaN/Inf) rows cannot
            # leak into the sum.  Keep it a select, not a multiply-by-mask.
            rows = jax.lax.broadcasted_iota(jnp.int32, loss.shape, 0)
            write(jnp.sum(jnp.where(rows < valid_last_rows, loss, 0.0)))


def _row_alignment(*dtypes):
    # Sublane tile height: 8 for 4-byte, 16 for 2-byte, 32 for 1-byte dtypes.
    align = 8
    for dt in dtypes:
        align = max(align, 32 // max(1, dt.itemsize))
    return align


def _lane_dense_shape(B, C):
    """Free (row-major bitcast) reshape of (B, C) into a lane-dense 2-D view."""
    if C % 128 == 0:
        return B, C
    N = B * C
    if N % 128 != 0:
        # TODO(synk): tile the class dim as well for very large C when B*C is
        # not a multiple of 128; full-C rows are fine for typical heads.
        return B, C
    for W in (1024, 512, 256, 128):
        if N % W == 0 and (N // W) >= 16:
            return N // W, W
    return N // 128, 128


def _chip_tuning():
    """(per-input tile byte budget, scoped VMEM limit) picked per chip."""
    tile_bytes = 2 * 1024 * 1024          # safe everywhere (v7x: 64 MiB VMEM)
    vmem_limit = 32 * 1024 * 1024
    try:
        info = pltpu.get_tpu_info()
        cap = None
        for name in ("vmem_capacity_bytes", "vmem_bytes", "vmem_size_bytes"):
            cap = getattr(info, name, None)
            if cap is not None:
                break
        if cap is not None and cap >= 100 * 1024 * 1024:   # v5e/v6e: 128 MiB
            tile_bytes = 4 * 1024 * 1024
            vmem_limit = 64 * 1024 * 1024
    except Exception:
        pass
    return tile_bytes, vmem_limit


def focal_loss(x, t, gamma=GAMMA, *, binary_targets=False, block_rows=None,
               tile_bytes=None, vmem_limit_bytes=None):
    if x.shape != t.shape:
        raise ValueError(
            "Target size ({}) must be the same as input size ({})".format(
                t.shape, x.shape))
    if x.ndim != 2:
        raise ValueError("focal_loss expects (batch, classes) inputs")
    B, C = x.shape

    chip_tile, chip_vmem = _chip_tuning()
    if tile_bytes is None:
        tile_bytes = chip_tile
    if vmem_limit_bytes is None:
        vmem_limit_bytes = chip_vmem

    # Lane-dense view: elementwise + global sum, so a contiguous row-major
    # reshape (free in XLA) is semantically transparent.
    rows, cols = _lane_dense_shape(B, C)
    if (rows, cols) != (B, C):
        x = x.reshape(rows, cols)
        t = t.reshape(rows, cols)

    align = _row_alignment(x.dtype, t.dtype)

    if block_rows is None:
        if rows <= align:
            block_rows = rows                      # one full-array block
        else:
            # Byte budget per tile (f32 working set), rounded to sublane tiles.
            budget = max(align, (tile_bytes // (4 * cols)) // align * align)
            # Cap at ~half the rows so there are always >= 2 grid tiles and
            # both v7x TensorCores get work (harmless on 1-TC chips).
            half = -(-rows // 2)
            half = -(-half // align) * align
            block_rows = min(budget, half)
    else:
        block_rows = min(int(block_rows), rows)
        if block_rows != rows and block_rows % align != 0:
            raise ValueError(
                "block_rows must be a multiple of {} (or the full row count) "
                "for dtype {}".format(align, x.dtype))

    num_tiles = -(-rows // block_rows)
    rem = rows - (num_tiles - 1) * block_rows
    valid_last_rows = None if rem == block_rows else rem

    kernel = functools.partial(
        _focal_loss_tile_kernel,
        gamma=float(gamma),
        num_tiles=num_tiles,
        valid_last_rows=valid_last_rows,
        binary_targets=bool(binary_targets),
    )

    partials = pl.pallas_call(
        kernel,
        out_shape=jax.ShapeDtypeStruct(
            (num_tiles * _OUT_BLOCK[0], _OUT_BLOCK[1]), jnp.float32),
        grid_spec=pltpu.PrefetchScalarGridSpec(
            num_scalar_prefetch=0,
            grid=(num_tiles,),
            in_specs=[
                pl.BlockSpec((block_rows, cols), lambda i: (i, 0)),
                pl.BlockSpec((block_rows, cols), lambda i: (i, 0)),
            ],
            out_specs=pl.BlockSpec(_OUT_BLOCK, lambda i: (i, 0)),
        ),
        compiler_params=pltpu.CompilerParams(
            dimension_semantics=("parallel",),
            vmem_limit_bytes=int(vmem_limit_bytes),
        ),
    )(x, t)

    # Each tile's block is a splat of its partial sum; pick slot [0, 0].
    total = jnp.sum(partials.reshape(num_tiles, -1)[:, 0])
    # sum(dim=1).mean() over the original batch axis == global_sum / B.
    return total / B


# -------------------- pure-JAX reference (original formulation) --------------------

def _log_sigmoid(z):
    # Numerically stable logsigmoid, matching torch.nn.functional.logsigmoid.
    return jnp.minimum(z, 0.0) - jnp.log1p(jnp.exp(-jnp.abs(z)))


def focal_loss_ref(x, t, gamma=GAMMA):
    x = x.astype(jnp.float32)
    t = t.astype(jnp.float32)
    max_val = jnp.maximum(-x, 0.0)
    loss = x - x * t + max_val + jnp.log(jnp.exp(-max_val) + jnp.exp(-x - max_val))
    invprobs = _log_sigmoid(-x * (t * 2.0 - 1.0))
    loss = jnp.exp(invprobs * gamma) * loss
    return loss.sum(axis=1).mean()


if __name__ == "__main__":
    key = jax.random.PRNGKey(0)
    k1, k2, k3, k4 = jax.random.split(key, 4)

    # 1) Small multi-label head, f32.  (32, 96) -> lane-dense (24, 128) view,
    #    2 grid tiles (16 + masked 8).
    B, C = 32, 96
    x = jax.random.normal(k1, (B, C), dtype=jnp.float32) * 2.0
    t = (jax.random.uniform(k2, (B, C)) > 0.5).astype(jnp.float32)
    out = jax.block_until_ready(focal_loss(x, t))
    ref = focal_loss_ref(x, t)
    assert jnp.allclose(out, ref, rtol=1e-5, atol=1e-5), (out, ref)

    # 1b) Same data, binary-target fast path (one fewer EUP exp per element).
    out_b = jax.block_until_ready(focal_loss(x, t, binary_targets=True))
    assert jnp.allclose(out_b, ref, rtol=1e-5, atol=1e-5), (out_b, ref)

    # 1c) Non-default gamma exercises the generic logsigmoid/exp branch.
    out_g = jax.block_until_ready(focal_loss(x, t, gamma=3.0))
    ref_g = focal_loss_ref(x, t, gamma=3.0)
    assert jnp.allclose(out_g, ref_g, rtol=1e-5, atol=1e-5), (out_g, ref_g)

    # 2) Shape whose flat size is not a multiple of 128: falls back to the
    #    (B, C) row layout, 2 tiles with a masked 14-row remainder.
    B2, C2 = 30, 160
    x2 = jax.random.normal(k3, (B2, C2), dtype=jnp.float32) * 3.0
    t2 = (jax.random.uniform(k4, (B2, C2)) > 0.5).astype(jnp.float32)
    out2 = jax.block_until_ready(focal_loss(x2, t2))
    ref2 = focal_loss_ref(x2, t2)
    assert jnp.allclose(out2, ref2, rtol=1e-5, atol=1e-5), (out2, ref2)

    # 3) bf16 inputs (half the HBM bytes); kernel upcasts to f32 internally,
    #    so it matches the f32 reference computed on the upcast bf16 values.
    x3 = x.astype(jnp.bfloat16)
    t3 = t.astype(jnp.bfloat16)
    out3 = jax.block_until_ready(focal_loss(x3, t3, binary_targets=True))
    ref3 = focal_loss_ref(x3.astype(jnp.float32), t3.astype(jnp.float32))
    assert jnp.allclose(out3, ref3, rtol=1e-4, atol=1e-4), (out3, ref3)

    print("KERNEL_OK")
</pallas_src>

<mosaic_0001>
module attributes {stable_mosaic.version = 11 : i64} {
  func.func @_focal_loss_tile_kernel(%arg0: i32, %arg1: memref<16x128xf32, #tpu.memory_space<vmem>>, %arg2: memref<16x128xf32, #tpu.memory_space<vmem>>, %arg3: memref<8x128xf32, #tpu.memory_space<vmem>>) attributes {dimension_semantics = [#tpu.dimension_semantics<parallel>], iteration_bounds = array<i64: 2>, scalar_prefetch = 0 : i64, scratch_operands = 0 : i64, tpu.core_type = #tpu.core_type<tc>, window_params = [{transform_indices = @transform_0, window_bounds = array<i64: 16, 128>}, {transform_indices = @transform_1, window_bounds = array<i64: 16, 128>}, {transform_indices = @transform_2, window_bounds = array<i64: 8, 128>}]} {
    %c0 = arith.constant 0 : index
    %c0_0 = arith.constant 0 : index
    %0 = vector.load %arg1[%c0, %c0_0] : memref<16x128xf32, #tpu.memory_space<vmem>>, vector<16x128xf32>
    %c0_1 = arith.constant 0 : index
    %c0_2 = arith.constant 0 : index
    %1 = vector.load %arg2[%c0_1, %c0_2] : memref<16x128xf32, #tpu.memory_space<vmem>>, vector<16x128xf32>
    %2 = math.absf %0 : vector<16x128xf32>
    %cst = arith.constant 0.000000e+00 : f32
    %3 = vector.broadcast %cst : f32 to vector<16x128xf32>
    %4 = arith.subf %3, %2 : vector<16x128xf32>
    %5 = math.exp %4 : vector<16x128xf32>
    %cst_3 = arith.constant 0.000000e+00 : f32
    %6 = vector.broadcast %cst_3 : f32 to vector<16x128xf32>
    %7 = arith.maximumf %0, %6 : vector<16x128xf32>
    %8 = arith.mulf %0, %1 : vector<16x128xf32>
    %9 = arith.subf %7, %8 : vector<16x128xf32>
    %10 = math.log1p %5 : vector<16x128xf32>
    %11 = arith.addf %9, %10 : vector<16x128xf32>
    %cst_4 = arith.constant 2.000000e+00 : f32
    %12 = vector.broadcast %cst_4 : f32 to vector<16x128xf32>
    %13 = arith.mulf %12, %1 : vector<16x128xf32>
    %cst_5 = arith.constant 1.000000e+00 : f32
    %14 = vector.broadcast %cst_5 : f32 to vector<16x128xf32>
    %15 = arith.subf %14, %13 : vector<16x128xf32>
    %16 = arith.mulf %0, %15 : vector<16x128xf32>
    %17 = math.absf %16 : vector<16x128xf32>
    %cst_6 = arith.constant 0.000000e+00 : f32
    %18 = vector.broadcast %cst_6 : f32 to vector<16x128xf32>
    %19 = arith.subf %18, %17 : vector<16x128xf32>
    %20 = math.exp %19 : vector<16x128xf32>
    %cst_7 = arith.constant 0.000000e+00 : f32
    %21 = vector.broadcast %cst_7 : f32 to vector<16x128xf32>
    %22 = arith.cmpf oge, %16, %21 : vector<16x128xf32>
    %cst_8 = arith.constant 1.000000e+00 : f32
    %23 = vector.broadcast %cst_8 : f32 to vector<16x128xf32>
    %24 = arith.select %22, %23, %20 : vector<16x128xi1>, vector<16x128xf32>
    %cst_9 = arith.constant 1.000000e+00 : f32
    %25 = vector.broadcast %cst_9 : f32 to vector<16x128xf32>
    %26 = arith.addf %25, %20 : vector<16x128xf32>
    %27 = arith.divf %24, %26 : vector<16x128xf32>
    %28 = arith.mulf %27, %27 : vector<16x128xf32>
    %29 = arith.mulf %28, %11 : vector<16x128xf32>
    %c1_i32 = arith.constant 1 : i32
    %30 = arith.cmpi eq, %arg0, %c1_i32 : i32
    %c1_i32_10 = arith.constant 1 : i32
    %31 = arith.cmpi ne, %arg0, %c1_i32_10 : i32
    %32 = arith.extui %31 : i1 to i32
    %c0_i32 = arith.constant 0 : i32
    %33 = arith.cmpi ne, %32, %c0_i32 : i32
    scf.if %33 {
      %36 = vector.shape_cast %29 : vector<16x128xf32> to vector<1x16x128xf32>
      %cst_12 = arith.constant dense<0.000000e+00> : vector<1xf32>
      %37 = vector.multi_reduction <add>, %36, %cst_12 [1, 2] : vector<1x16x128xf32> to vector<1xf32>
      %38 = vector.shape_cast %37 : vector<1xf32> to vector<1x1x1xf32>
      %39 = vector.extract %38[0, 0, 0] : f32 from vector<1x1x1xf32>
      %cst_13 = arith.constant 0.000000e+00 : f32
      %40 = vector.broadcast %cst_13 : f32 to vector<8x128xf32>
      %41 = vector.broadcast %39 : f32 to vector<8x128xf32>
      %42 = arith.addf %40, %41 : vector<8x128xf32>
      %c0_14 = arith.constant 0 : index
      %c0_15 = arith.constant 0 : index
      %43 = vector.load %arg3[%c0_14, %c0_15] : memref<8x128xf32, #tpu.memory_space<vmem>>, vector<8x128xf32>
      tpu.vector_store %arg3[%c0_14, %c0_15], %42 {strides = array<i32>} : memref<8x128xf32, #tpu.memory_space<vmem>>, vector<8x128xf32>,
    } else {
    }
    %34 = arith.extui %30 : i1 to i32
    %c0_i32_11 = arith.constant 0 : i32
    %35 = arith.cmpi ne, %34, %c0_i32_11 : i32
    scf.if %35 {
      %36 = tpu.iota {dimensions = array<i32: 0>} : vector<16x128xi32>
      %c8_i32 = arith.constant 8 : i32
      %37 = vector.broadcast %c8_i32 : i32 to vector<16x128xi32>
      %38 = arith.cmpi slt, %36, %37 : vector<16x128xi32>
      %cst_12 = arith.constant 0.000000e+00 : f32
      %39 = vector.broadcast %cst_12 : f32 to vector<16x128xf32>
      %40 = arith.select %38, %29, %39 : vector<16x128xi1>, vector<16x128xf32>
      %41 = vector.shape_cast %40 : vector<16x128xf32> to vector<1x16x128xf32>
      %cst_13 = arith.constant dense<0.000000e+00> : vector<1xf32>
      %42 = vector.multi_reduction <add>, %41, %cst_13 [1, 2] : vector<1x16x128xf32> to vector<1xf32>
      %43 = vector.shape_cast %42 : vector<1xf32> to vector<1x1x1xf32>
      %44 = vector.extract %43[0, 0, 0] : f32 from vector<1x1x1xf32>
      %cst_14 = arith.constant 0.000000e+00 : f32
      %45 = vector.broadcast %cst_14 : f32 to vector<8x128xf32>
      %46 = vector.broadcast %44 : f32 to vector<8x128xf32>
      %47 = arith.addf %45, %46 : vector<8x128xf32>
      %c0_15 = arith.constant 0 : index
      %c0_16 = arith.constant 0 : index
      %48 = vector.load %arg3[%c0_15, %c0_16] : memref<8x128xf32, #tpu.memory_space<vmem>>, vector<8x128xf32>
      tpu.vector_store %arg3[%c0_15, %c0_16], %47 {strides = array<i32>} : memref<8x128xf32, #tpu.memory_space<vmem>>, vector<8x128xf32>,
    } else {
    }
    return
  }
  func.func @transform_0(%arg0: i32) -> (i32, i32) {
    %c0_i32 = arith.constant 0 : i32
    %c0_i32_0 = arith.constant 0 : i32
    return %arg0, %c0_i32 : i32, i32
  }
  func.func @transform_1(%arg0: i32) -> (i32, i32) {
    %c0_i32 = arith.constant 0 : i32
    %c0_i32_0 = arith.constant 0 : i32
    return %arg0, %c0_i32 : i32, i32
  }
  func.func @transform_2(%arg0: i32) -> (i32, i32) {
    %c0_i32 = arith.constant 0 : i32
    %c0_i32_0 = arith.constant 0 : i32
    return %arg0, %c0_i32 : i32, i32
  }
}

</mosaic_0001>

<bundles_post_ra>
// kernel: tpu_custom_call.1
= control target key start
LH: loop header
LB: loop body
LE: loop exit
PB: predicated region body
PF: predicated region fallthrough
CT: control target
= control target key end

     0   :  { %7 = vsyncpa [#allocation3], 0  ;;  %s988_s0 = inlined_call_operand.hbm [shape: f32[24,128], index: 0, kind: input, shape index: {}]   ;;  %s989_s1 = inlined_call_operand.hbm [shape: f32[24,128], index: 1, kind: input, shape index: {}]   ;;  %s990_s2 = inlined_call_operand.hbm [shape: f32[16,128], index: 2, kind: output, shape index: {}]  }
   0x1   :  { %9 = vsyncpa [#allocation3 + $0x1], 0 }
   0x2   :  { %10 = vsyncpa [#allocation6], 0 }
   0x3   :  { %12 = vsyncpa [#allocation6 + $0x1], 0 }
   0x4   :  { %13 = vsyncpa [#allocation4], 0 }
   0x5   :  { %15 = vsyncpa [#allocation4 + $0x1], 0  ;;  %s737_s9 = smov 0   ;;  %s739_s10 = smov 0  }
   0x6   :  { %s741_s11 = smov 0   ;;  %s743_s12 = smov 0  }
   0x7 LB: > { %s758_s13 = sadd.s32 4294967295, %s714_s12   ;;  %s472_s14 = sadd.s32 4294967294, %s714_s12   ;;  %s714_s12 = sphi %s743_s12, %s1011_s12   ;;  %s710_s11 = sphi %s741_s11, %s1010_s11   ;;  %s706_s10 = sphi %s739_s10, %s1009_s10   ;;  %s702_s9 = sphi %s737_s9, %s1008_s9  }
   0x8   : > { %s762_s15 = sadd.s32 1, %s714_s12   ;;  %s28_s16 = sadd.s32 1, %s710_s11 }
   0x9   : > { %s25_s17 = ssub.s32 %s714_s12, %s762_s15  ;;  %p35_p0 = scmp.ne.s32.totalorder %s710_s11, %s706_s10 }
   0xa   : > { %p26_p1 = scmp.eq.s32.totalorder %s25_s17, 0  ;;  %p36_p2 = scmp.eq.s32.totalorder %s714_s12, 0 }
   0xb   : > { %p41_p3 = scmp.ne.s32.totalorder %s706_s10, %s702_s9  ;;  %p42_p4 = scmp.eq.s32.totalorder %s758_s13, 0 }
   0xc   : > { %s774_s18 = scalar_select %p26_p1, %s710_s11, %s28_s16  }
   0xd   : > { %p776_p5 = por %p36_p2, %p35_p0  ;;  %p780_p6 = por %p42_p4, %p41_p3 }
   0xe   : > { %p992_p7 = scmp.eq.s32.totalorder %s758_s13, 1  ;;  %p97_p8 = scmp.eq.s32.totalorder %s472_s14, 1 }
   0xf   : > { %p991_p11 = scmp.ge.s32.totalorder %s714_s12, 2 }
  0x10   : > { %p787_p9 = por %p992_p7, %p35_p0  ;;  %p791_p10 = por %p97_p8, %p41_p3 }
  0x11   : > { %113 = sbr.rel (%p991_p11) target bundleno = 94 (0x5e), region = 16 }
  0x12   : > { %s996_s22 = scalar_select %p791_p10, 1, 0 }
  0x16   : > { %116 = sbr.rel (!%p776_p5) target bundleno = 58 (0x3a), region = 20  ;;  %s117_s23 = sand.u32 (%p776_p5), 1, %s710_s11  }
  0x17   : > { %s476_s24 = sshll.u32 (%p776_p5), %s714_s12, 1  ;;  %s475_s25 = sshll.u32 (%p776_p5), %s117_s23, 4 }
  0x18   : > { %s123_s26 = ssub.s32 (%p776_p5), 3, %s476_s24  ;;  %s805_s30 = scalar_lea.sflag (%p776_p5), [#allocation3], %s117_s23 }
  0x19   : > { %p124_p12 = scmp.lt.s32.totalorder (%p776_p5), %s123_s26, 2  ;;  %s121_s3 = scalar_lea.vmem (%p776_p5), [#allocation2], %s475_s25 }
  0x1b   : > { %s1013_s26 = smov (!%p124_p12, %s123_s26), 2 }
  0x1c   : > { %s477_s27 = sshll.u32 %s1013_s26, 3 }
  0x1d   : > { %s127_s28 = ssub.s32 16, %s477_s27 }
  0x1e   : > { %s128_s29 = sshll.u32 %s127_s28, 4 }
  0x1f   : > { %129 = vsyncadd %s805_s30, %s128_s29  ;;  %p808_p13 = scmp.ne.s32.totalorder %s477_s27, 0  ;;  %s499_s5 = sshll.u32 %s714_s12, 4 }
  0x20   : > { %s132_s8 = scalar_lea.hbm %s988_s0, %s499_s5  ;;  %s816_s14 = sshll.u32 %s121_s3, 4  ;;  %s137_s14 = int_to_ptr.vmem [resolvable:$true] %s816_s14 }
  0x21   : > { %s134_s16 = sshll.u32 %s132_s8, 4  ;;  %s481_s17 = sshll.u32 %s1013_s26, 7  ;;  %s819_s16 = int_to_ptr.hbm [resolvable:$true] %s134_s16 }
  0x22   : > { %s566_s23 = sshra.s32 %s819_s16, 4  ;;  %s568_s24 = sshrl.u32 %s481_s17, 4  ;;  %s567_s23 = int_to_ptr.hbm [resolvable:$true] %s566_s23 }
  0x23   : > { %s573_s25 = scalar_lea.hbm %s567_s23, %s568_s24  ;;  %s577_s29 = scalar_lea.hbm %s988_s0, 24 }
  0x24   : > { %p574_p0 = scmp.ne.s32.totalorder %s567_s23, %s573_s25  ;;  %p578_p3 = scmp.lt.s32.totalorder %s567_s23, %s988_s0 }
  0x25   : > { %p579_p4 = scmp.lt.s32.totalorder %s577_s29, %s573_s25 }
  0x26   : > { %p575_p1 = pnand %p574_p0, %p808_p13 }
  0x27   : > { %p580_p8 = por %p579_p4, %p578_p3 }
  0x28   : > { %p576_p2 = pneg %p575_p1 }
  0x2a   : > { %p581_p12 = pnand %p580_p8, %p576_p2 }
  0x2c   : > { %584 = shalt.err (!%p581_p12)
}
  0x2d   : > { %s585_s6 = sshra.s32 %s137_s14, 4  ;;  %s716_s8 = smov [#allocation2]   ;;  %s586_s6 = int_to_ptr.vmem [resolvable:$true] %s585_s6 }
  0x2e   : > { %s592_s7 = scalar_lea.vmem %s586_s6, %s568_s24  ;;  %s596_s27 = scalar_lea.vmem %s716_s8, 32 }
  0x2f   : > { %p593_p0 = scmp.ne.s32.totalorder %s586_s6, %s592_s7  ;;  %p598_p7 = scmp.lt.s32.totalorder %s596_s27, %s592_s7 }
  0x31   : > { %p594_p1 = pnand %p593_p0, %p808_p13 }
  0x33   : > { %p595_p11 = pneg %p594_p1 }
  0x35   : > { %p600_p10 = pnand %p598_p7, %p595_p11 }
  0x37   : > { %603 = shalt.err (!%p600_p10)
}
  0x38   : > { %s717_s23 = smov 128   ;;  %s718_s25 = smov 8  }
  0x39   : > { %142 = dma.hbm_to_vmem [thread:$0]  (%p808_p13), %s819_s16, %s481_s17, %s137_s14, %s805_s30, %s717_s23, %s717_s23, %s718_s25  }
  0x3a PF: > { %145 = sbr.rel (!%p776_p5) target bundleno = 94 (0x5e), region = 24  ;;  %s146_s24 = sand.u32 (%p776_p5), 1, %s710_s11  }
  0x3b   : > { %s483_s28 = sshll.u32 (%p776_p5), %s714_s12, 1  ;;  %s482_s29 = sshll.u32 (%p776_p5), %s146_s24, 4 }
  0x3c   : > { %s152_s3 = ssub.s32 (%p776_p5), 3, %s483_s28  ;;  %s852_s7 = scalar_lea.sflag (%p776_p5), [#allocation6], %s146_s24 }
  0x3d   : > { %p153_p7 = scmp.lt.s32.totalorder (%p776_p5), %s152_s3, 2  ;;  %s150_s26 = scalar_lea.vmem (%p776_p5), [#allocation5], %s482_s29 }
  0x3f   : > { %s1015_s3 = smov (!%p153_p7, %s152_s3), 2 }
  0x40   : > { %s484_s5 = sshll.u32 %s1015_s3, 3 }
  0x41   : > { %s156_s6 = ssub.s32 16, %s484_s5 }
  0x42   : > { %s157_s4 = sshll.u32 %s156_s6, 4 }
  0x43   : > { %158 = vsyncadd %s852_s7, %s157_s4  ;;  %p855_p5 = scmp.ne.s32.totalorder %s484_s5, 0  ;;  %s500_s30 = sshll.u32 %s714_s12, 4 }
  0x44   : > { %s161_s17 = scalar_lea.hbm %s989_s1, %s500_s30  ;;  %s863_s8 = sshll.u32 %s150_s26, 4  ;;  %s166_s8 = int_to_ptr.vmem [resolvable:$true] %s863_s8 }
  0x45   : > { %s163_s27 = sshll.u32 %s161_s17, 4  ;;  %s488_s23 = sshll.u32 %s1015_s3, 7  ;;  %s866_s27 = int_to_ptr.hbm [resolvable:$true] %s163_s27 }
  0x46   : > { %s605_s25 = sshra.s32 %s866_s27, 4  ;;  %s607_s24 = sshrl.u32 %s488_s23, 4  ;;  %s606_s25 = int_to_ptr.hbm [resolvable:$true] %s605_s25 }
  0x47   : > { %s612_s28 = scalar_lea.hbm %s606_s25, %s607_s24  ;;  %s616_s6 = scalar_lea.hbm %s989_s1, 24 }
  0x48   : > { %p613_p10 = scmp.ne.s32.totalorder %s606_s25, %s612_s28  ;;  %p617_p2 = scmp.lt.s32.totalorder %s606_s25, %s989_s1 }
  0x49   : > { %p618_p3 = scmp.lt.s32.totalorder %s616_s6, %s612_s28 }
  0x4a   : > { %p614_p11 = pnand %p613_p10, %p855_p5 }
  0x4b   : > { %p619_p4 = por %p618_p3, %p617_p2 }
  0x4c   : > { %p615_p13 = pneg %p614_p11 }
  0x4e   : > { %p620_p8 = pnand %p619_p4, %p615_p13 }
  0x50   : > { %623 = shalt.err (!%p620_p8)
}
  0x51   : > { %s624_s30 = sshra.s32 %s166_s8, 4  ;;  %s719_s16 = smov [#allocation5]   ;;  %s625_s30 = int_to_ptr.vmem [resolvable:$true] %s624_s30 }
  0x52   : > { %s631_s14 = scalar_lea.vmem %s625_s30, %s607_s24  ;;  %s635_s17 = scalar_lea.vmem %s719_s16, 32 }
  0x53   : > { %p632_p12 = scmp.ne.s32.totalorder %s625_s30, %s631_s14  ;;  %p637_p7 = scmp.lt.s32.totalorder %s635_s17, %s631_s14 }
  0x55   : > { %p633_p0 = pnand %p632_p12, %p855_p5 }
  0x57   : > { %p634_p1 = pneg %p633_p0 }
  0x59   : > { %p639_p10 = pnand %p637_p7, %p634_p1 }
  0x5b   : > { %642 = shalt.err (!%p639_p10)
}
  0x5c   : > { %s720_s25 = smov 128   ;;  %s721_s28 = smov 8  }
  0x5d   : > { %171 = dma.hbm_to_vmem [thread:$0]  (%p855_p5), %s866_s27, %s488_s23, %s166_s8, %s852_s7, %s720_s25, %s720_s25, %s721_s28  }
  0x5e PF: > { %p489_p11 = scmp.ge.s32.totalorder %s714_s12, 1  ;;  %p173_p13 = scmp.lt.s32.totalorder %s714_s12, 3 }
  0x60   : > { %p174_p2 = pnand %p489_p11, %p173_p13 }
  0x61   : > { %s895_s24 = sand.u32 (!%p174_p2), 1, %s706_s10  }
  0x62   : > { %177 = sbr.rel (%p174_p2) target bundleno = 537 (0x219), region = 28  ;;  %s490_s29 = sshll.u32 (!%p174_p2), %s895_s24, 4 }
  0x63   : > { %s180_s5 = scalar_lea.sflag (!%p174_p2), [#allocation3], %s895_s24  ;;  %s183_s19 = scalar_lea.vmem (!%p174_p2), [#allocation2], %s490_s29 }
  0x67   : > { %689 = dma.done.wait (%p780_p6), %s180_s5, 256  }
  0x68   : > { %691 = vsyncadd (%p780_p6), %s180_s5, 4294967040  ;;  %s190_s3 = scalar_lea.sflag [#allocation6], %s895_s24  ;;  %s193_s7 = scalar_lea.vmem [#allocation5], %s490_s29 }
  0x69   : > { %693 = dma.done.wait (%p780_p6), %s190_s3, 256  }
  0x6a   : > { %695 = vsyncadd (%p780_p6), %s190_s3, 4294967040  ;;  %s492_s8 = sshll.u32 %s895_s24, 3  ;;  %v230_v0 = vld [vmem:[%s183_s19] sm:$0xff]  ;;  %v909_v1 = vld [vmem:[%s183_s19 + $0x8] sm:$0xff]  ;;  %p1005_p6 = scmp.eq.s32.totalorder %s758_s13, 1 }
  0x6b   : > { %v232_v2 = vld [vmem:[%s193_s7] sm:$0xff]  ;;  %v233_v3 = vld [vmem:[%s193_s7 + $0x8] sm:$0xff]  ;;  %v234_v4 = vand.u32 2147483647, %v230_v0  ;;  %v235_v5 = vand.u32 2147483647, %v909_v1 }
  0x6c   : > { %v268_v6 = vmul.f32 2.0, %v232_v2  ;;  %v269_v7 = vmul.f32 2.0, %v233_v3  ;;  %v242_v31 = vmax.f32 %v230_v0, 0.0  ;;  %v244_v32 = vmul.f32 %v232_v2, %v230_v0  ;;  %s947_s20 = scalar_lea.vmem [#allocation7], %s492_s8 }
  0x6d   : > { %v236_v8 = vsub.f32 0.0, %v234_v4  ;;  %v237_v9 = vsub.f32 0.0, %v235_v5  ;;  %v243_v36 = vmax.f32 %v909_v1, 0.0  ;;  %v245_v38 = vmul.f32 %v233_v3, %v909_v1 }
  0x6e   : > { %v270_v10 = vsub.f32 1.0, %v268_v6  ;;  %v271_v11 = vsub.f32 1.0, %v269_v7  ;;  %v246_v39 = vsub.f32 %v242_v31, %v244_v32 }
  0x6f   : > { %v238_v12 = vmul.f32 1.442695, %v236_v8  ;;  %v240_v15 = vmul.f32 1.442695, %v237_v9  ;;  %v247_v63 = vsub.f32 %v243_v36, %v245_v38 }
  0x70   : > { %v912_v13 = vmul.f32 %v270_v10, %v230_v0  ;;  %v915_v14 = vmul.f32 %v271_v11, %v909_v1 }
  0x71   : > { %550 = vpow2.f32 %v238_v12 }
  0x72   : > { %v274_v16 = vand.u32 2147483647, %v912_v13  ;;  %v275_v17 = vand.u32 2147483647, %v915_v14  ;;  %552 = vpow2.f32 %v240_v15  ;;  %vm282_vm0 = vcmp.ge.f32.partialorder %v912_v13, 0.0 }
  0x73   : > { %vm283_vm7 = vcmp.ge.f32.partialorder %v915_v14, 0.0 }
  0x74   : > { %v276_v18 = vsub.f32 0.0, %v274_v16  ;;  %v277_v19 = vsub.f32 0.0, %v275_v17 }
  0x76   : > { %v278_v20 = vmul.f32 1.442695, %v276_v18  ;;  %v280_v21 = vmul.f32 1.442695, %v277_v19 }
  0x77   : > { %v551_v22 = vpop.eup %550 }
  0x78   : > { %554 = vpow2.f32 %v278_v20  ;;  %v553_v23 = vpop.eup %552  ;;  %v248_v24 = vadd.f32 1.0, %v551_v22  ;;  %v251_v29 = vmul.f32 -0.5, %v551_v22  ;;  %v254_v40 = vand.u32 2147483647, %v551_v22 }
  0x79   : > { %556 = vpow2.f32 %v280_v21  ;;  %v257_v27 = vadd.f32 1.0, %v553_v23  ;;  %v260_v34 = vmul.f32 -0.5, %v553_v23  ;;  %v263_v44 = vand.u32 2147483647, %v553_v23 }
  0x7a   : > { %558 = vlog2.f32 %v248_v24  ;;  %v252_v33 = vadd.f32 1.0, %v251_v29  ;;  %vm922_vm5 = vcmp.lt.f32.partialorder %v254_v40, 0.0004427343 }
  0x7b   : > { %v261_v43 = vadd.f32 1.0, %v260_v34  ;;  %vm926_vm6 = vcmp.lt.f32.partialorder %v263_v44, 0.0004427343 }
  0x7c   : > { %v253_v42 = vmul.f32 %v551_v22, %v252_v33 }
  0x7d   : > { %v262_v57 = vmul.f32 %v553_v23, %v261_v43 }
  0x7e   : > { %v555_v25 = vpop.eup %554 }
  0x7f   : > { %v557_v26 = vpop.eup %556  ;;  %v286_v28 = vadd.f32 1.0, %v555_v25  ;;  %v284_v3 = vsel %vm282_vm0, 1.0, %v555_v25 }
  0x80   : > { %v287_v30 = vadd.f32 1.0, %v557_v26  ;;  %v559_v35 = vpop.eup %558  ;;  %v285_v6 = vsel %vm283_vm7, 1.0, %v557_v26 }
  0x81   : > { %560 = vrcp.f32 %v286_v28  ;;  %v250_v47 = vmul.f32 0.6931472, %v559_v35  ;;  %vm293_vm1 = vweird.f32 %v286_v28  ;;  %v299_v48 = vand.u32 2147483648, %v286_v28 }
  0x82   : > { %562 = vrcp.f32 %v287_v30  ;;  %v297_v51 = vand.u32 2147483647, %v286_v28  ;;  %v314_v52 = vand.u32 2147483648, %v287_v30  ;;  %vm308_vm3 = vweird.f32 %v287_v30 }
  0x83   : > { %564 = vlog2.f32 %v257_v27  ;;  %v312_v54 = vand.u32 2147483647, %v287_v30  ;;  %v300_v61 = vor.u32 1.1754944e-38, %v299_v48  ;;  %v256_v2 = vsel %vm922_vm5, %v253_v42, %v250_v47 }
  0x84   : > { %vm298_vm9 = vcmp.eq.f32.partialorder %v297_v51, 8.507059e+37  ;;  %v315_v1 = vor.u32 1.1754944e-38, %v314_v52  ;;  %v266_v10 = vadd.f32 %v256_v2, %v246_v39 }
  0x85   : > { %vm313_vm11 = vcmp.eq.f32.partialorder %v312_v54, 8.507059e+37 }
  0x87   : > { %v561_v37 = vpop.eup %560 }
  0x88   : > { %v563_v41 = vpop.eup %562  ;;  %v289_v45 = vmul.f32 %v561_v37, %v286_v28  ;;  %vm294_vm2 = vweird.f32 %v561_v37 }
  0x89   : > { %v565_v46 = vpop.eup %564  ;;  %v304_v49 = vmul.f32 %v563_v41, %v287_v30  ;;  %vm309_vm4 = vweird.f32 %v563_v41  ;;  %vm932_vm8 = vmor %vm293_vm1, %vm294_vm2 }
  0x8a   : > { %v290_v50 = vsub.f32 1.0, %v289_v45  ;;  %v259_v56 = vmul.f32 0.6931472, %v565_v46  ;;  %vm310_vm10 = vmor %vm308_vm3, %vm309_vm4 }
  0x8b   : > { %v305_v53 = vsub.f32 1.0, %v304_v49 }
  0x8c   : > { %v291_v58 = vmul.f32 %v561_v37, %v290_v50  ;;  %v265_v5 = vsel %vm926_vm6, %v262_v57, %v259_v56 }
  0x8d   : > { %v306_v62 = vmul.f32 %v563_v41, %v305_v53  ;;  %v267_v14 = vadd.f32 %v265_v5, %v247_v63 }
  0x8e   : > { %v292_v0 = vadd.f32 %v561_v37, %v291_v58 }
  0x8f   : > { %v307_v4 = vadd.f32 %v563_v41, %v306_v62 }
  0x90   : > { %v296_v7 = vsel %vm932_vm8, %v561_v37, %v292_v0 }
  0x91   : > { %v301_v8 = vsel %vm298_vm9, %v300_v61, %v296_v7  ;;  %v311_v9 = vsel %vm310_vm10, %v563_v41, %v307_v4 }
  0x92   : > { %v302_v11 = vmul.f32 %v301_v8, %v284_v3  ;;  %v316_v12 = vsel %vm313_vm11, %v315_v1, %v311_v9 }
  0x93   : > { %v317_v15 = vmul.f32 %v316_v12, %v285_v6  ;;  %326 = sbr.rel (%p1005_p6) target bundleno = 335 (0x14f), region = 40 }
  0x94   : > { %v318_v16 = vmul.f32 %v302_v11, %v302_v11 }
  0x95   : > { %v319_v13 = vmul.f32 %v317_v15, %v317_v15 }
  0x96   : > { %v320_v17 = vmul.f32 %v318_v16, %v266_v10 }
  0x97   : > { %v321_v18 = vmul.f32 %v319_v13, %v267_v14 }
  0x99   : > { %v327_v19 = vadd.f32 %v321_v18, %v320_v17 }
  0x9b   : > { %328 = vadd.xlane.f32.xlu0 %v327_v19 }
 0x10e   : > { %v329_v20 = vpop.xlane.xlu0 %328 }
 0x10f   : > { %v330_v21 = vrot.slane %v329_v20, 4 }
 0x111   : > { %v331_v22 = vadd.f32 %v330_v21, %v329_v20 }
 0x113   : > { %v332_v23 = vrot.slane %v331_v22, 2 }
 0x115   : > { %v333_v24 = vadd.f32 %v332_v23, %v331_v22 }
 0x117   : > { %v334_v25 = vrot.slane %v333_v24, 1 }
 0x119   : > { %v335_v26 = vadd.f32 %v334_v25, %v333_v24 }
 0x11b   : > { %501 = vpush %v335_v26 }
 0x14c   : > { %s502_s27 = spop %501 }
 0x14d   : > { %v337_v27 = vstv %s502_s27 }
 0x14e   : > { %339 = vst [vmem:[%s947_s20] sm:$0xff] %v337_v27 }
 0x14f PF: > { %p494_p5 = scmp.ne.s32.totalorder %s758_s13, 1 }
 0x151   : > { %342 = sbr.rel (%p494_p5) target bundleno = 522 (0x20a), region = 44 }
 0x156   : > { %351 = vadd.xlane.f32.xlu0 %v320_v17 }
 0x1c9   : > { %v352_v28 = vpop.xlane.xlu0 %351 }
 0x1ca   : > { %v353_v29 = vrot.slane %v352_v28, 4 }
 0x1cc   : > { %v354_v30 = vadd.f32 %v353_v29, %v352_v28 }
 0x1ce   : > { %v355_v31 = vrot.slane %v354_v30, 2 }
 0x1d0   : > { %v356_v32 = vadd.f32 %v355_v31, %v354_v30 }
 0x1d2   : > { %v357_v33 = vrot.slane %v356_v32, 1 }
 0x1d4   : > { %v358_v34 = vadd.f32 %v357_v33, %v356_v32 }
 0x1d6   : > { %503 = vpush %v358_v34 }
 0x207   : > { %s504_s23 = spop %503 }
 0x208   : > { %v360_v35 = vstv %s504_s23 }
 0x209   : > { %362 = vst [vmem:[%s947_s20] sm:$0xff] %v360_v35 }
 0x20a PF: > { %s496_s6 = sshll.u32 %s758_s13, 3  ;;  %s376_s14 = sshll.u32 %s947_s20, 4  ;;  %s377_s14 = int_to_ptr.vmem [resolvable:$true] %s376_s14 }
 0x20b   : > { %s374_s30 = scalar_lea.hbm %s990_s2, %s496_s6  ;;  %s364_s17 = scalar_lea.sflag [#allocation4], %s895_s24 }
 0x20c   : > { %s378_s16 = sshll.u32 %s374_s30, 4  ;;  %s664_s13 = scalar_lea.hbm %s990_s2, 16  ;;  %s379_s16 = int_to_ptr.hbm [resolvable:$true] %s378_s16 }
 0x20d   : > { %s658_s25 = sshra.s32 %s379_s16, 4  ;;  %s659_s25 = int_to_ptr.hbm [resolvable:$true] %s658_s25 }
 0x20e   : > { %s660_s28 = scalar_lea.hbm %s659_s25, 8  ;;  %p665_p12 = scmp.lt.s32.totalorder %s659_s25, %s990_s2 }
 0x20f   : > { %p661_p3 = scmp.ne.s32.totalorder %s659_s25, %s660_s28  ;;  %p666_p0 = scmp.lt.s32.totalorder %s664_s13, %s660_s28 }
 0x211   : > { %p662_p4 = pnand %p661_p3, %p787_p9  ;;  %p667_p1 = por %p666_p0, %p665_p12 }
 0x213   : > { %p663_p8 = pneg %p662_p4 }
 0x215   : > { %p668_p7 = pnand %p667_p1, %p663_p8 }
 0x217   : > { %671 = shalt.err (!%p668_p7)
}
 0x218   : > { %507 = dma.vmem_to_hbm [thread:$0]  (%p787_p9), %s377_s14, 128, %s379_s16, %s364_s17  }
 0x219 PF: > { %s390_s24 = sand.u32 1, %s702_s9   ;;  %p1006_p10 = scmp.ne.s32.totalorder %s996_s22, 0 }
 0x21a   : > { %p1007_p11 = scmp.ge.s32.totalorder %s714_s12, 2  ;;  %s391_s7 = scalar_lea.sflag [#allocation4], %s390_s24 }
 0x21c   : > { %p510_p13 = pnand %p1007_p11, %p1006_p10 }
 0x21e   : > { %p511_p2 = pneg %p510_p13 }
 0x220   : > { %697 = dma.done.wait (%p511_p2), %s391_s7, 128  }
 0x221   : > { %699 = vsyncadd (%p511_p2), %s391_s7, 4294967168  ;;  %p18_p6 = scmp.ge.s32.totalorder %s762_s15, 4   ;;  %s1008_s9 = smov %s706_s10 }
 0x222   : > { %s1009_s10 = smov %s710_s11  ;;  %s1010_s11 = smov %s774_s18 }
 0x223   : > { %s1011_s12 = smov %s762_s15  ;;  %20 = sbr.rel (!%p18_p6) target bundleno = 7 (0x7), region = 94 }
 0x228   :  { %397 = vsyncpa [#allocation3], 1 }
 0x229   :  { %399 = vsyncpa [#allocation3 + $0x1], 1 }
 0x22a   :  { %400 = vsyncpa [#allocation6], 1 }
 0x22b   :  { %402 = vsyncpa [#allocation6 + $0x1], 1 }
 0x22c   :  { %403 = vsyncpa [#allocation4], 1 }
 0x22d   :  { %405 = vsyncpa [#allocation4 + $0x1], 1 }

</bundles_post_ra>
